<compile_context>
chip_gen: v7x
topology: tpu7x:2x2x1
jax: 0.10.0
libtpu: 0.0.40
codegen_flags: <defaults>
</compile_context>

<pallas_src>
import jax
import jax.numpy as jnp
from jax.experimental import pallas as pl
from jax.experimental.pallas import tpu as pltpu


def lstm_cell_kernel(xh_ref, c_ref, w_ref, b_ref, out_ref):
    """Fused LSTM cell step.

    xh_ref : (B, 2I)  [x | h] concatenated along the feature (lane) axis
    c_ref  : (B, H)
    w_ref  : (2I, 4H) [W_ih^T ; W_hh^T], gate order [in, forget, cell, out]
    b_ref  : (1, 4H)  bias_ih + bias_hh (pre-summed)
    out_ref: (B, 2H)  [state_h | state_c]
    """
    xh = xh_ref[...]
    c = c_ref[...]
    H = c.shape[-1]

    # Single K=2I contraction on the MXU (f32 accumulate) + one bias add.
    g = jnp.dot(xh, w_ref[...], preferred_element_type=jnp.float32) + b_ref[...]

    # Two full-vreg transcendental passes instead of four quarter-vreg ones.
    sg = jax.nn.sigmoid(g)   # valid for gates 0,1,3
    tg = jnp.tanh(g)         # valid for gate 2

    ingate     = sg[:, 0 * H:1 * H]
    forgetgate = sg[:, 1 * H:2 * H]
    cellgate   = tg[:, 2 * H:3 * H]
    outgate    = sg[:, 3 * H:4 * H]

    state_c = forgetgate * c + ingate * cellgate
    state_h = outgate * jnp.tanh(state_c)

    # Single lane-dense (B, 2H) store; split into h/c in the wrapper.
    out_ref[...] = jnp.concatenate([state_h, state_c], axis=-1)


def prepare_params(weight_ih_l0, weight_hh_l0, bias_ih_l0, bias_hh_l0):
    """Once-per-model parameter prep (== LSTMCell.update_param()).

    weight_*_l0: (4H, I).  The PyTorch plumbing
        transpose(view(4,H,I), 1, 2) -> (4,I,H) -> gates fused along lanes
    is algebraically just weight_*_l0.T -> (I, 4H).  Stack the ih/hh weights
    along the contraction axis and pre-sum the biases so the kernel performs
    a single K=2I matmul and a single bias add per step.
    """
    w_fused = jnp.concatenate(
        [jnp.transpose(weight_ih_l0), jnp.transpose(weight_hh_l0)], axis=0)  # (2I, 4H)
    b_fused = (bias_ih_l0 + bias_hh_l0).reshape(1, -1)                       # (1, 4H)
    return w_fused, b_fused


@jax.jit
def lstm_cell_apply(x, h, c, w_fused, b_fused):
    """Fast path: x, h: (1, B, I); c: (1, B, H); fused params already prepared."""
    B = x.shape[1]
    I = x.shape[2]
    H = c.shape[2]

    xh = jnp.concatenate([x.reshape(B, I), h.reshape(B, I)], axis=-1)  # (B, 2I)
    c2 = c.reshape(B, H)

    vmem = pltpu.MemorySpace.VMEM
    out = pl.pallas_call(
        lstm_cell_kernel,
        out_shape=jax.ShapeDtypeStruct((B, 2 * H), jnp.float32),
        in_specs=[
            pl.BlockSpec(memory_space=vmem),  # xh
            pl.BlockSpec(memory_space=vmem),  # c
            pl.BlockSpec(memory_space=vmem),  # w_fused
            pl.BlockSpec(memory_space=vmem),  # b_fused
        ],
        out_specs=pl.BlockSpec(memory_space=vmem),
    )(xh, c2, w_fused, b_fused)

    state_h = out[:, :H].reshape(1, B, H)
    state_c = out[:, H:].reshape(1, B, H)
    return state_h, state_h, state_c


def lstm_cell_forward(x, h, c, weight_ih_l0, weight_hh_l0, bias_ih_l0,
                      bias_hh_l0, hidden_size, input_size):
    """Drop-in LSTMCell.forward(x, h, c) -> (state_h, state_h, state_c)."""
    del hidden_size, input_size  # shapes are carried by the arrays
    w_fused, b_fused = prepare_params(weight_ih_l0, weight_hh_l0,
                                      bias_ih_l0, bias_hh_l0)
    return lstm_cell_apply(x, h, c, w_fused, b_fused)


def reference_forward(x, h, c, weight_ih_l0, weight_hh_l0, bias_ih_l0,
                      bias_hh_l0, hidden_size, input_size):
    """Pure-JAX mirror of the PyTorch forward (for correctness check)."""
    I, H = input_size, hidden_size
    wih_t = jnp.transpose(weight_ih_l0.reshape(4, H, I), (0, 2, 1))
    whh_t = jnp.transpose(weight_hh_l0.reshape(4, H, I), (0, 2, 1))
    bih_t = bias_ih_l0.reshape(4, 1, H)
    bhh_t = bias_hh_l0.reshape(4, 1, H)
    ih = jnp.matmul(x, wih_t) + bih_t      # (4, B, H)
    hh = jnp.matmul(h, whh_t) + bhh_t
    ih0, ih1, ih2, ih3 = jnp.split(ih, 4, axis=0)
    hh0, hh1, hh2, hh3 = jnp.split(hh, 4, axis=0)
    ingate = jax.nn.sigmoid(ih0 + hh0)
    forgetgate = jax.nn.sigmoid(ih1 + hh1)
    cellgate = jnp.tanh(ih2 + hh2)
    outgate = jax.nn.sigmoid(ih3 + hh3)
    state_c = forgetgate * c + ingate * cellgate
    state_h = outgate * jnp.tanh(state_c)
    return state_h, state_h, state_c


if __name__ == "__main__":
    hidden_size = 32
    input_size = 32   # the module's W_hh path implicitly assumes H == I
    B = 8

    key = jax.random.PRNGKey(0)
    k_wih, k_whh, k_bih, k_bhh, k_x, k_h, k_c = jax.random.split(key, 7)

    weight_ih_l0 = jax.random.normal(k_wih, (4 * hidden_size, input_size), jnp.float32)
    weight_hh_l0 = jax.random.normal(k_whh, (4 * hidden_size, input_size), jnp.float32)
    bias_ih_l0 = jax.random.normal(k_bih, (4 * hidden_size,), jnp.float32)
    bias_hh_l0 = jax.random.normal(k_bhh, (4 * hidden_size,), jnp.float32)

    x = jax.random.normal(k_x, (1, B, input_size), jnp.float32)
    h = jax.random.normal(k_h, (1, B, input_size), jnp.float32)
    c = jax.random.normal(k_c, (1, B, hidden_size), jnp.float32)

    # Hoisted once (cacheable across timesteps); per-step path is lstm_cell_apply.
    w_fused, b_fused = prepare_params(weight_ih_l0, weight_hh_l0,
                                      bias_ih_l0, bias_hh_l0)

    out_h, out_h2, out_c = lstm_cell_apply(x, h, c, w_fused, b_fused)
    jax.block_until_ready((out_h, out_h2, out_c))

    ref_h, _, ref_c = reference_forward(
        x, h, c, weight_ih_l0, weight_hh_l0, bias_ih_l0, bias_hh_l0,
        hidden_size, input_size)

    assert out_h.shape == (1, B, hidden_size) and out_c.shape == (1, B, hidden_size)
    assert jnp.allclose(out_h, ref_h, atol=1e-4, rtol=1e-4)
    assert jnp.allclose(out_c, ref_c, atol=1e-4, rtol=1e-4)

    print("KERNEL_OK")
</pallas_src>

<mosaic_0001>
module attributes {stable_mosaic.version = 11 : i64} {
  func.func @lstm_cell_kernel(%arg0: memref<8x64xf32, #tpu.memory_space<vmem>>, %arg1: memref<8x32xf32, #tpu.memory_space<vmem>>, %arg2: memref<64x128xf32, #tpu.memory_space<vmem>>, %arg3: memref<1x128xf32, #tpu.memory_space<vmem>>, %arg4: memref<8x64xf32, #tpu.memory_space<vmem>>) attributes {dimension_semantics = [], scalar_prefetch = 0 : i64, scratch_operands = 0 : i64, tpu.core_type = #tpu.core_type<tc>} {
    %c0 = arith.constant 0 : index
    %c0_0 = arith.constant 0 : index
    %0 = vector.load %arg0[%c0, %c0_0] : memref<8x64xf32, #tpu.memory_space<vmem>>, vector<8x64xf32>
    %c0_1 = arith.constant 0 : index
    %c0_2 = arith.constant 0 : index
    %1 = vector.load %arg1[%c0_1, %c0_2] : memref<8x32xf32, #tpu.memory_space<vmem>>, vector<8x32xf32>
    %c0_3 = arith.constant 0 : index
    %c0_4 = arith.constant 0 : index
    %2 = vector.load %arg2[%c0_3, %c0_4] : memref<64x128xf32, #tpu.memory_space<vmem>>, vector<64x128xf32>
    %cst = arith.constant dense<0.000000e+00> : vector<8x128xf32>
    %3 = tpu.matmul %0, %2, %cst {dimension_numbers = #tpu.dot_dimension_numbers<[1], [0], [0], [1], [0, 0, 1, 1], [], []>} : vector<8x64xf32>, vector<64x128xf32>, vector<8x128xf32> -> vector<8x128xf32>
    %c0_5 = arith.constant 0 : index
    %c0_6 = arith.constant 0 : index
    %4 = vector.load %arg3[%c0_5, %c0_6] : memref<1x128xf32, #tpu.memory_space<vmem>>, vector<1x128xf32>
    %5 = vector.broadcast %4 : vector<1x128xf32> to vector<8x128xf32>
    %6 = arith.addf %3, %5 : vector<8x128xf32>
    %7 = arith.negf %6 : vector<8x128xf32>
    %8 = math.exp %7 : vector<8x128xf32>
    %cst_7 = arith.constant 1.000000e+00 : f32
    %9 = vector.broadcast %cst_7 : f32 to vector<8x128xf32>
    %10 = arith.addf %9, %8 : vector<8x128xf32>
    %11 = arith.divf %9, %10 : vector<8x128xf32>
    %12 = math.tanh %6 : vector<8x128xf32>
    %13 = vector.extract_strided_slice %11 {offsets = [0, 0], sizes = [8, 32], strides = [1, 1]} : vector<8x128xf32> to vector<8x32xf32>
    %14 = vector.extract_strided_slice %11 {offsets = [0, 32], sizes = [8, 32], strides = [1, 1]} : vector<8x128xf32> to vector<8x32xf32>
    %15 = vector.extract_strided_slice %12 {offsets = [0, 64], sizes = [8, 32], strides = [1, 1]} : vector<8x128xf32> to vector<8x32xf32>
    %16 = vector.extract_strided_slice %11 {offsets = [0, 96], sizes = [8, 32], strides = [1, 1]} : vector<8x128xf32> to vector<8x32xf32>
    %17 = arith.mulf %14, %1 : vector<8x32xf32>
    %18 = arith.mulf %13, %15 : vector<8x32xf32>
    %19 = arith.addf %17, %18 : vector<8x32xf32>
    %20 = math.tanh %19 : vector<8x32xf32>
    %21 = arith.mulf %16, %20 : vector<8x32xf32>
    %22 = tpu.concatenate %21, %19 in 1 : vector<8x32xf32>, vector<8x32xf32> -> vector<8x64xf32>
    %c0_8 = arith.constant 0 : index
    %c0_9 = arith.constant 0 : index
    %23 = vector.load %arg4[%c0_8, %c0_9] : memref<8x64xf32, #tpu.memory_space<vmem>>, vector<8x64xf32>
    tpu.vector_store %arg4[%c0_8, %c0_9], %22 {strides = array<i32>} : memref<8x64xf32, #tpu.memory_space<vmem>>, vector<8x64xf32>,
    return
  }
}

</mosaic_0001>

<bundles_post_ra>
// kernel: lstm_cell_apply.1
= control target key start
LH: loop header
LB: loop body
LE: loop exit
PB: predicated region body
PF: predicated region fallthrough
CT: control target
= control target key end

     0   :  { %9 = vsyncpa [#allocation3], 0  ;;  %s245_s15 = smov [#allocation2]   ;;  %s304_s0 = inlined_call_operand.vmem [shape: f32[8,64], index: 0, kind: input, shape index: {}]   ;;  %s305_s1 = inlined_call_operand.vmem [shape: f32[8,32], index: 1, kind: input, shape index: {}]   ;;  %s306_s2 = inlined_call_operand.hbm [shape: f32[64,128], index: 2, kind: input, shape index: {}]   ;;  %s307_s3 = inlined_call_operand.vmem [shape: f32[1,128], index: 3, kind: input, shape index: {}]   ;;  %s308_s4 = inlined_call_operand.vmem [shape: f32[8,64], index: 4, kind: output, shape index: {}]  }
   0x1   :  { %s19_s16 = sshll.u32 %s245_s15, 4  ;;  %s221_s19 = scalar_lea.hbm %s306_s2, 1024  ;;  %s20_s16 = int_to_ptr.vmem [resolvable:$true] %s19_s16 }
   0x2   :  { %p222_p0 = scmp.ne.s32.totalorder %s306_s2, %s221_s19  ;;  %p225_p1 = scmp.lt.u32.totalorder %s221_s19, %s306_s2 }
   0x4   :  { %p227_p2 = pnand %p225_p1, %p222_p0 }
   0x6   :  { %230 = shalt.err (!%p227_p2)
}
   0x7   :  { %s231_s24 = scalar_lea.vmem %s20_s16, 1024  ;;  %p236_p4 = scmp.lt.s32.totalorder %s20_s16, %s20_s16 }
   0x8   :  { %p232_p3 = scmp.ne.s32.totalorder %s20_s16, %s231_s24  ;;  %p237_p5 = scmp.lt.s32.totalorder %s231_s24, %s231_s24 }
   0xa   :  { %p238_p6 = por %p237_p5, %p236_p4 }
   0xc   :  { %p239_p7 = pnand %p238_p6, %p232_p3 }
   0xe   :  { %242 = shalt.err (!%p239_p7)
}
   0xf   :  { %s246_s25 = smov 128   ;;  %s247_s26 = smov 8  }
  0x10   :  { %25 = dma.hbm_to_vmem [thread:$0]  %s306_s2, 1024, %s20_s16, [#allocation3], %s246_s25, %s246_s25, %s247_s26  }
  0x11   :  { %243 = dma.done.wait [#allocation3], 1024  }
  0x12   :  { %244 = vsyncadd [#allocation3], 4294966272  ;;  %v248_v0 = vmov 0.0|0.0   ;;  %vm249_vm0 = vmmov 0   ;;  %v250_v1 = vmov 0.0   ;;  %v33_v2 = vld [vmem:[#allocation2] sm:$0xff] }
  0x13   :  { %193 = vmatprep.subr.bf16.mxu0 %v248_v0  ;;  %190 = vmatprep.mubr.msk.f32.mxu0 %vm249_vm0, %v250_v1  ;;  %v34_v3 = vld [vmem:[#allocation2 + $0x8] sm:$0xff]  ;;  %v35_v4 = vld [vmem:[#allocation2 + $0x10] sm:$0xff]  ;;  %v36_v6 = vld [vmem:[#allocation2 + $0x18] sm:$0xff]  ;;  %vm48_vm1 = vcmask 523264   ;;  %s251_s6 = smov 64   ;;  %s252_s9 = smov 32  }
  0x14   :  { %v194_v5 = vpack.c.bf16 %v34_v3, %v33_v2  ;;  %v197_v7 = vpack.c.bf16 %v36_v6, %v35_v4  ;;  %v37_v8 = vld [vmem:[#allocation2 + $0x20] sm:$0xff]  ;;  %v38_v9 = vld [vmem:[#allocation2 + $0x28] sm:$0xff]  ;;  %v39_v11 = vld [vmem:[#allocation2 + $0x30] sm:$0xff]  ;;  %vm154_vm2 = vcmask 261120  }
  0x15   :  { %v200_v10 = vpack.c.bf16 %v38_v9, %v37_v8  ;;  %v40_v12 = vld [vmem:[#allocation2 + $0x38] sm:$0xff]  ;;  %v31_v14 = vld [vmem:[%s304_s0] sm:$0xff] }
  0x16   :  { %195 = vmatpush3.bf16.msra.mxu0 %v194_v5  ;;  %v203_v13 = vpack.c.bf16 %v40_v12, %v39_v11  ;;  %v162_v15 = vld [vmem:[%s307_s3] ss:$0 sm:$0xff] }
  0x17   :  { %196 = vmatprep.subr.bf16.mxu0 %v248_v0  ;;  %v32_v20 = vld [vmem:[%s305_s1] sm:$0xff] }
  0x1a   :  { %198 = vmatpush3.bf16.msra.mxu0 %v197_v7 }
  0x1b   :  { %199 = vmatprep.subr.bf16.mxu0 %v248_v0 }
  0x1e   :  { %201 = vmatpush3.bf16.msra.mxu0 %v200_v10 }
  0x1f   :  { %202 = vmatprep.subr.bf16.mxu0 %v248_v0 }
  0x22   :  { %204 = vmatpush3.bf16.msra.mxu0 %v203_v13 }
  0x25   :  { %191 = vmatmul.mubr.msk.f32.vlgmr.msra.gmra.mrb[0].mxu0 %vm48_vm1, %v31_v14 }
  0xf8   :  { %v118_v16 = vpop.f32.mrb[0].mxu0 }
  0xf9   :  { %v119_v17 = vadd.f32 %v162_v15, %v118_v16  ;;  %v192_v18 = vpop.f32.mrb[1].mxu0 }
  0xfb   :  { %213 = vtanh.f32 %v119_v17  ;;  %v164_v21 = vmul.f32 -1.442695, %v119_v17 }
  0xfd   :  { %215 = vpow2.f32 %v164_v21 }
 0x105   :  { %v214_v19 = vpop.eup %213 }
 0x106   :  { %135 = vrot.lane.b32.xlu0 %v214_v19, %s251_s6 }
 0x107   :  { %v216_v22 = vpop.eup %215 }
 0x108   :  { %v125_v23 = vadd.f32 1.0, %v216_v22 }
 0x10a   :  { %130 = vrot.lane.b32.xlu0 %v32_v20, %s252_s9  ;;  %217 = vrcp.f32 %v125_v23 }
 0x114   :  { %v218_v24 = vpop.eup %217 }
 0x178   :  { %v136_v25 = vpop.permute.xlu0 %135 }
 0x179   :  { %v138_v26 = vmul.f32 %v218_v24, %v136_v25 }
 0x17b   :  { %140 = vrot.lane.b32.xlu1 %v138_v26, %s252_s9 }
 0x17c   :  { %v131_v27 = vpop.permute.xlu0 %130 }
 0x17d   :  { %v133_v28 = vmul.f32 %v218_v24, %v131_v27 }
 0x1ed   :  { %v141_v29 = vpop.permute.xlu1 %140 }
 0x1ee   :  { %v143_v30 = vadd.f32 %v141_v29, %v133_v28 }
 0x1f0   :  { %219 = vtanh.f32 %v143_v30 }
 0x1fa   :  { %v220_v31 = vpop.eup %219 }
 0x1fb   :  { %146 = vrot.lane.b32.xlu1 %v220_v31, %s251_s6 }
 0x26d   :  { %v147_v32 = vpop.permute.xlu1 %146 }
 0x26e   :  { %v149_v33 = vmul.f32 %v218_v24, %v147_v32 }
 0x270   :  { %151 = vrot.lane.b32.xlu0 %v149_v33, %s252_s9 }
 0x2e2   :  { %v152_v34 = vpop.permute.xlu0 %151 }
 0x2e3   :  { %v155_v35 = vsel %vm154_vm2, %v152_v34, %v143_v30 }
 0x2e4   :  { %156 = vst.msk [vmem:[%s308_s4] sm:$0xff] %vm48_vm1, %v155_v35 }
 0x2e5   :  { %161 = vsyncpa [#allocation3], 1 }

</bundles_post_ra>
